<compile_context>
chip_gen: v6e
topology: v6e:2x2x1
jax: 0.10.0
libtpu: 0.0.40
codegen_flags: <defaults>
</compile_context>

<pallas_src>
import functools

import jax
import jax.numpy as jnp
from jax.experimental import pallas as pl
from jax.experimental.pallas import tpu as pltpu

LANE = 128      # vreg lane width
SUBLANE = 8     # f32 sublane width


def _round_up(n, m):
    return (n + m - 1) // m * m


def _pad2d(a, rows, cols):
    """Zero-pad a 2D array up to (rows, cols)."""
    r, c = a.shape
    return jnp.pad(a, ((0, rows - r), (0, cols - c)))


def mlp_kernel(x_ref, w1_ref, b1_ref, w2_ref, b2_ref, w3_ref, b3_ref, o_ref):
    hi = jax.lax.Precision.HIGHEST
    f32 = jnp.float32
    # Layer 1: Linear + ReLU   (TB, F) @ (F, H1p) -> (TB, H1p)
    h1 = jnp.dot(x_ref[...], w1_ref[...], preferred_element_type=f32, precision=hi)
    h1 = jnp.maximum(h1 + b1_ref[...], 0.0)
    # Layer 2: Linear + ReLU   (TB, H1p) @ (H1p, H2p) -> (TB, H2p)
    h2 = jnp.dot(h1, w2_ref[...], preferred_element_type=f32, precision=hi)
    h2 = jnp.maximum(h2 + b2_ref[...], 0.0)
    # Layer 3: Linear (no activation)  (TB, H2p) @ (H2p, n_out) -> (TB, n_out)
    out = jnp.dot(h2, w3_ref[...], preferred_element_type=f32, precision=hi)
    o_ref[...] = (out + b3_ref[...]).astype(o_ref.dtype)


@functools.partial(jax.jit, static_argnames=("tb",))
def mlp_forward(x, params, *, tb=4096):
    """x: (B, n_feature); params: w1,b1,w2,b2,w3,b3 (weights (in,out), biases (1,out))."""
    w1, b1, w2, b2, w3, b3 = (params[k] for k in ("w1", "b1", "w2", "b2", "w3", "b3"))
    B, n_feat = x.shape
    h1_dim, h2_dim, n_out = w1.shape[1], w2.shape[1], w3.shape[1]

    # --- pad hidden dims to the 128-lane vreg width (zero columns/rows) ------
    # The final output dim is NOT padded: only w3's input rows are padded so the
    # kernel's last matmul narrows straight to n_out and the HBM store stays
    # exactly (B, n_out) bytes.
    h1p = _round_up(h1_dim, LANE)
    h2p = _round_up(h2_dim, LANE)

    w1p = _pad2d(w1, n_feat, h1p)
    b1p = _pad2d(b1, 1, h1p)
    w2p = _pad2d(w2, h1p, h2p)
    b2p = _pad2d(b2, 1, h2p)
    w3p = _pad2d(w3, h2p, n_out)   # rows padded to h2p, columns stay n_out
    # b3 stays (1, n_out)

    # --- batch tiling: no input padding; ragged last tile handled by Pallas --
    tb_eff = _round_up(min(tb, _round_up(B, SUBLANE)), SUBLANE)
    grid = (pl.cdiv(B, tb_eff),)

    def resident(shape):
        # Constant block index across the grid -> loaded once, stays in VMEM.
        return pl.BlockSpec(shape, lambda i: (0, 0))

    # Advisory cost hint (real, unpadded work) for XLA's scheduler.
    flops = 2 * B * (n_feat * h1_dim + h1_dim * h2_dim + h2_dim * n_out)
    param_bytes = 4 * (w1.size + b1.size + w2.size + b2.size + w3.size + b3.size)
    bytes_accessed = 4 * B * (n_feat + n_out) + param_bytes

    out = pl.pallas_call(
        mlp_kernel,
        out_shape=jax.ShapeDtypeStruct((B, n_out), jnp.float32),
        grid=grid,
        in_specs=[
            pl.BlockSpec((tb_eff, n_feat), lambda i: (i, 0)),   # streamed x tiles
            resident(w1p.shape), resident(b1p.shape),
            resident(w2p.shape), resident(b2p.shape),
            resident(w3p.shape), resident(b3.shape),
        ],
        out_specs=pl.BlockSpec((tb_eff, n_out), lambda i: (i, 0)),  # narrow HBM store
        compiler_params=pltpu.CompilerParams(
            dimension_semantics=("parallel",),
            vmem_limit_bytes=32 * 1024 * 1024,   # tb=4096 needs ~12-14 MB; safe on v5e/v6e/v7x
        ),
        cost_estimate=pl.CostEstimate(
            flops=flops, transcendentals=0, bytes_accessed=bytes_accessed),
    )(x, w1p, b1p, w2p, b2p, w3p, b3)

    return out


def init_params(key, n_feature, n_output, hidden_layers=(20, 20)):
    """Deterministic init mirroring nn.Linear shapes (stored transposed as (in, out))."""
    dims = [n_feature, hidden_layers[0], hidden_layers[1], n_output]
    params = {}
    keys = jax.random.split(key, 6)
    for i in range(3):
        fan_in, fan_out = dims[i], dims[i + 1]
        bound = 1.0 / jnp.sqrt(fan_in)
        params[f"w{i+1}"] = jax.random.uniform(
            keys[2 * i], (fan_in, fan_out), jnp.float32, -bound, bound)
        params[f"b{i+1}"] = jax.random.uniform(
            keys[2 * i + 1], (1, fan_out), jnp.float32, -bound, bound)
    return params


def reference_forward(x, params):
    hi = jax.lax.Precision.HIGHEST
    h1 = jnp.maximum(jnp.dot(x, params["w1"], precision=hi) + params["b1"], 0.0)
    h2 = jnp.maximum(jnp.dot(h1, params["w2"], precision=hi) + params["b2"], 0.0)
    return jnp.dot(h2, params["w3"], precision=hi) + params["b3"]


if __name__ == "__main__":
    n_feature, n_output = 16, 4

    key = jax.random.PRNGKey(0)
    kx, kp, kx2 = jax.random.split(key, 3)
    params = init_params(kp, n_feature, n_output, hidden_layers=(20, 20))

    # Small-shape check (single tile, exact sublane multiple).
    batch = 8
    x = jax.random.normal(kx, (batch, n_feature), dtype=jnp.float32)
    out = jax.block_until_ready(mlp_forward(x, params))
    ref = reference_forward(x, params)
    assert out.shape == (batch, n_output)
    assert jnp.allclose(out, ref, atol=1e-5, rtol=1e-5)

    # Multi-tile check (exercises grid pipelining + ragged last tile, no x pad).
    batch2 = 300
    x2 = jax.random.normal(kx2, (batch2, n_feature), dtype=jnp.float32)
    out2 = jax.block_until_ready(mlp_forward(x2, params, tb=128))
    ref2 = reference_forward(x2, params)
    assert out2.shape == (batch2, n_output)
    assert jnp.allclose(out2, ref2, atol=1e-5, rtol=1e-5)

    print("KERNEL_OK")
</pallas_src>

<mosaic_0001>
module attributes {stable_mosaic.version = 11 : i64} {
  func.func @mlp_kernel(%arg0: i32, %arg1: memref<8x16xf32, #tpu.memory_space<vmem>>, %arg2: memref<16x128xf32, #tpu.memory_space<vmem>>, %arg3: memref<1x128xf32, #tpu.memory_space<vmem>>, %arg4: memref<128x128xf32, #tpu.memory_space<vmem>>, %arg5: memref<1x128xf32, #tpu.memory_space<vmem>>, %arg6: memref<128x4xf32, #tpu.memory_space<vmem>>, %arg7: memref<1x4xf32, #tpu.memory_space<vmem>>, %arg8: memref<8x4xf32, #tpu.memory_space<vmem>>) attributes {dimension_semantics = [#tpu.dimension_semantics<parallel>], iteration_bounds = array<i64: 1>, scalar_prefetch = 0 : i64, scratch_operands = 0 : i64, tpu.core_type = #tpu.core_type<tc>, window_params = [{transform_indices = @transform_0, window_bounds = array<i64: 8, 16>}, {pipeline_mode = #tpu.pipeline_mode<synchronous>, transform_indices = @transform_1, window_bounds = array<i64: 16, 128>}, {pipeline_mode = #tpu.pipeline_mode<synchronous>, transform_indices = @transform_2, window_bounds = array<i64: 1, 128>}, {pipeline_mode = #tpu.pipeline_mode<synchronous>, transform_indices = @transform_3, window_bounds = array<i64: 128, 128>}, {pipeline_mode = #tpu.pipeline_mode<synchronous>, transform_indices = @transform_4, window_bounds = array<i64: 1, 128>}, {pipeline_mode = #tpu.pipeline_mode<synchronous>, transform_indices = @transform_5, window_bounds = array<i64: 128, 4>}, {pipeline_mode = #tpu.pipeline_mode<synchronous>, transform_indices = @transform_6, window_bounds = array<i64: 1, 4>}, {transform_indices = @transform_7, window_bounds = array<i64: 8, 4>}]} {
    %c0 = arith.constant 0 : index
    %c0_0 = arith.constant 0 : index
    %0 = vector.load %arg1[%c0, %c0_0] : memref<8x16xf32, #tpu.memory_space<vmem>>, vector<8x16xf32>
    %c0_1 = arith.constant 0 : index
    %c0_2 = arith.constant 0 : index
    %1 = vector.load %arg2[%c0_1, %c0_2] : memref<16x128xf32, #tpu.memory_space<vmem>>, vector<16x128xf32>
    %cst = arith.constant dense<0.000000e+00> : vector<8x128xf32>
    %2 = tpu.matmul %0, %1, %cst {dimension_numbers = #tpu.dot_dimension_numbers<[1], [0], [0], [1], [0, 0, 1, 1], [], []>, precision = #tpu.contract_precision<fp32>} : vector<8x16xf32>, vector<16x128xf32>, vector<8x128xf32> -> vector<8x128xf32>
    %c0_3 = arith.constant 0 : index
    %c0_4 = arith.constant 0 : index
    %3 = vector.load %arg3[%c0_3, %c0_4] : memref<1x128xf32, #tpu.memory_space<vmem>>, vector<1x128xf32>
    %4 = vector.broadcast %3 : vector<1x128xf32> to vector<8x128xf32>
    %5 = arith.addf %2, %4 : vector<8x128xf32>
    %cst_5 = arith.constant 0.000000e+00 : f32
    %6 = vector.broadcast %cst_5 : f32 to vector<8x128xf32>
    %7 = arith.maximumf %5, %6 : vector<8x128xf32>
    %c0_6 = arith.constant 0 : index
    %c0_7 = arith.constant 0 : index
    %8 = vector.load %arg4[%c0_6, %c0_7] : memref<128x128xf32, #tpu.memory_space<vmem>>, vector<128x128xf32>
    %cst_8 = arith.constant dense<0.000000e+00> : vector<8x128xf32>
    %9 = tpu.matmul %7, %8, %cst_8 {dimension_numbers = #tpu.dot_dimension_numbers<[1], [0], [0], [1], [0, 0, 1, 1], [], []>, precision = #tpu.contract_precision<fp32>} : vector<8x128xf32>, vector<128x128xf32>, vector<8x128xf32> -> vector<8x128xf32>
    %c0_9 = arith.constant 0 : index
    %c0_10 = arith.constant 0 : index
    %10 = vector.load %arg5[%c0_9, %c0_10] : memref<1x128xf32, #tpu.memory_space<vmem>>, vector<1x128xf32>
    %11 = vector.broadcast %10 : vector<1x128xf32> to vector<8x128xf32>
    %12 = arith.addf %9, %11 : vector<8x128xf32>
    %cst_11 = arith.constant 0.000000e+00 : f32
    %13 = vector.broadcast %cst_11 : f32 to vector<8x128xf32>
    %14 = arith.maximumf %12, %13 : vector<8x128xf32>
    %c0_12 = arith.constant 0 : index
    %c0_13 = arith.constant 0 : index
    %15 = vector.load %arg6[%c0_12, %c0_13] : memref<128x4xf32, #tpu.memory_space<vmem>>, vector<128x4xf32>
    %cst_14 = arith.constant dense<0.000000e+00> : vector<8x4xf32>
    %16 = tpu.matmul %14, %15, %cst_14 {dimension_numbers = #tpu.dot_dimension_numbers<[1], [0], [0], [1], [0, 0, 1, 1], [], []>, precision = #tpu.contract_precision<fp32>} : vector<8x128xf32>, vector<128x4xf32>, vector<8x4xf32> -> vector<8x4xf32>
    %c0_15 = arith.constant 0 : index
    %c0_16 = arith.constant 0 : index
    %17 = vector.load %arg7[%c0_15, %c0_16] : memref<1x4xf32, #tpu.memory_space<vmem>>, vector<1x4xf32>
    %18 = vector.broadcast %17 : vector<1x4xf32> to vector<8x4xf32>
    %19 = arith.addf %16, %18 : vector<8x4xf32>
    %c0_17 = arith.constant 0 : index
    %c0_18 = arith.constant 0 : index
    %20 = vector.load %arg8[%c0_17, %c0_18] : memref<8x4xf32, #tpu.memory_space<vmem>>, vector<8x4xf32>
    tpu.vector_store %arg8[%c0_17, %c0_18], %19 {strides = array<i32>} : memref<8x4xf32, #tpu.memory_space<vmem>>, vector<8x4xf32>,
    return
  }
  func.func @transform_0(%arg0: i32) -> (i32, i32) {
    %c0_i32 = arith.constant 0 : i32
    %c0_i32_0 = arith.constant 0 : i32
    return %arg0, %c0_i32 : i32, i32
  }
  func.func @transform_1(%arg0: i32) -> (i32, i32) {
    %c0_i32 = arith.constant 0 : i32
    %c0_i32_0 = arith.constant 0 : i32
    %c0_i32_1 = arith.constant 0 : i32
    return %c0_i32, %c0_i32_0 : i32, i32
  }
  func.func @transform_2(%arg0: i32) -> (i32, i32) {
    %c0_i32 = arith.constant 0 : i32
    %c0_i32_0 = arith.constant 0 : i32
    %c0_i32_1 = arith.constant 0 : i32
    return %c0_i32, %c0_i32_0 : i32, i32
  }
  func.func @transform_3(%arg0: i32) -> (i32, i32) {
    %c0_i32 = arith.constant 0 : i32
    %c0_i32_0 = arith.constant 0 : i32
    %c0_i32_1 = arith.constant 0 : i32
    return %c0_i32, %c0_i32_0 : i32, i32
  }
  func.func @transform_4(%arg0: i32) -> (i32, i32) {
    %c0_i32 = arith.constant 0 : i32
    %c0_i32_0 = arith.constant 0 : i32
    %c0_i32_1 = arith.constant 0 : i32
    return %c0_i32, %c0_i32_0 : i32, i32
  }
  func.func @transform_5(%arg0: i32) -> (i32, i32) {
    %c0_i32 = arith.constant 0 : i32
    %c0_i32_0 = arith.constant 0 : i32
    %c0_i32_1 = arith.constant 0 : i32
    return %c0_i32, %c0_i32_0 : i32, i32
  }
  func.func @transform_6(%arg0: i32) -> (i32, i32) {
    %c0_i32 = arith.constant 0 : i32
    %c0_i32_0 = arith.constant 0 : i32
    %c0_i32_1 = arith.constant 0 : i32
    return %c0_i32, %c0_i32_0 : i32, i32
  }
  func.func @transform_7(%arg0: i32) -> (i32, i32) {
    %c0_i32 = arith.constant 0 : i32
    %c0_i32_0 = arith.constant 0 : i32
    return %arg0, %c0_i32 : i32, i32
  }
}

</mosaic_0001>

<bundles_post_ra>
// kernel: mlp_forward.1
= control target key start
LH: loop header
LB: loop body
LE: loop exit
PB: predicated region body
PF: predicated region fallthrough
CT: control target
= control target key end

     0   :  { %vm36_vm0 = vcmask 130048   ;;  %v2524_v0 = vmov 0.0   ;;  %vm2525_vm1 = vmmov 0   ;;  %vm1829_vm2 = vcmask 31744   ;;  %s3443_s1 = inlined_call_operand.vmem [shape: f32[16,128], index: 1, kind: input, shape index: {}]   ;;  %s3444_s0 = inlined_call_operand.vmem [shape: f32[8,16], index: 0, kind: input, shape index: {}]   ;;  %s3445_s3 = inlined_call_operand.vmem [shape: f32[128,128], index: 3, kind: input, shape index: {}]   ;;  %s3446_s2 = inlined_call_operand.vmem [shape: f32[1,128], index: 2, kind: input, shape index: {}]   ;;  %s3447_s5 = inlined_call_operand.vmem [shape: f32[128,4], index: 5, kind: input, shape index: {}]   ;;  %s3448_s4 = inlined_call_operand.vmem [shape: f32[1,128], index: 4, kind: input, shape index: {}]   ;;  %s3449_s6 = inlined_call_operand.vmem [shape: f32[1,4], index: 6, kind: input, shape index: {}]   ;;  %s3450_s7 = inlined_call_operand.vmem [shape: f32[8,4], index: 7, kind: output, shape index: {}]  }
   0x1   :  { %2060 = vmatprep.subr.mxu0 %v2524_v0  ;;  %v28_v1 = vld [vmem:[%s3443_s1 + $0x8] sm:$0xff]  ;;  %2067 = vmatprep.subr.mxu1 %v2524_v0  ;;  %v27_v2 = vld [vmem:[%s3443_s1] sm:$0xff]  ;;  %v515_v10 = vld [vmem:[%s3445_s3 + $0x78] sm:$0xff] }
   0x2   :  { %v26_v3 = vld [vmem:[%s3444_s0] sm:$0xff]  ;;  %v2577_v4 = vand.u32 4294901760, %v28_v1  ;;  %v2579_v5 = vand.u32 4294901760, %v27_v2  ;;  %2064 = vmatprep.mubr.msk.f32.mxu0 %vm2525_vm1, %v2524_v0  ;;  %2071 = vmatprep.mubr.msk.f32.mxu1 %vm2525_vm1, %v2524_v0  ;;  %v514_v14 = vld [vmem:[%s3445_s3 + $0x70] sm:$0xff]  ;;  %v2600_v16 = vand.u32 4294901760, %v515_v10  ;;  %v513_v19 = vld [vmem:[%s3445_s3 + $0x68] sm:$0xff] }
   0x3   :  { %v38_v6 = vsel %vm36_vm0, %v26_v3, 0  ;;  %v2605_v21 = vand.u32 4294901760, %v514_v14  ;;  %v512_v24 = vld [vmem:[%s3445_s3 + $0x60] sm:$0xff]  ;;  %v2613_v27 = vand.u32 4294901760, %v513_v19  ;;  %v511_v28 = vld [vmem:[%s3445_s3 + $0x58] sm:$0xff]  ;;  %v510_v31 = vld [vmem:[%s3445_s3 + $0x50] sm:$0xff] }
   0x4   :  { %v2585_v7 = vand.u32 4294901760, %v38_v6  ;;  %2061 = vmatpush3.msra.mxu0 %v2577_v4  ;;  %v147_v8 = vsub.f32 %v28_v1, %v2577_v4  ;;  %v154_v9 = vsub.f32 %v27_v2, %v2579_v5  ;;  %v2611_v26 = vsub.f32 %v515_v10, %v2600_v16  ;;  %v509_v35 = vld [vmem:[%s3445_s3 + $0x48] sm:$0xff]  ;;  %v508_v39 = vld [vmem:[%s3445_s3 + $0x40] sm:$0xff] }
   0x5   :  { %2062 = vmatprep.subr.mxu0 %v2524_v0  ;;  %v2620_v29 = vsub.f32 %v514_v14, %v2605_v21  ;;  %v2622_v30 = vand.u32 4294901760, %v512_v24  ;;  %v2631_v33 = vsub.f32 %v513_v19, %v2613_v27  ;;  %v2633_v34 = vand.u32 4294901760, %v511_v28  ;;  %v505_v10 = vld [vmem:[%s3445_s3 + $0x28] sm:$0xff]  ;;  %v504_v14 = vld [vmem:[%s3445_s3 + $0x20] sm:$0xff] }
   0x6   :  { %v108_v11 = vsub.f32 %v38_v6, %v2585_v7  ;;  %2063 = vmatpush3.msra.mxu0 %v2579_v5  ;;  %v148_v12 = vand.u32 4294901760, %v147_v8  ;;  %v155_v13 = vand.u32 4294901760, %v154_v9  ;;  %v617_v32 = vand.u32 4294901760, %v2611_v26 }
   0x7   :  { %2074 = vmatprep.subr.mxu0 %v2524_v0  ;;  %v624_v36 = vand.u32 4294901760, %v2620_v29  ;;  %v2644_v37 = vsub.f32 %v512_v24, %v2622_v30  ;;  %v2646_v38 = vand.u32 4294901760, %v510_v31  ;;  %v631_v41 = vand.u32 4294901760, %v2631_v33 }
   0x8   :  { %v109_v15 = vand.u32 4294901760, %v108_v11  ;;  %v149_v17 = vsub.f32 %v147_v8, %v148_v12  ;;  %v156_v18 = vsub.f32 %v154_v9, %v155_v13  ;;  %v618_v40 = vsub.f32 %v2611_v26, %v617_v32 }
   0x9   :  { %v2659_v42 = vsub.f32 %v511_v28, %v2633_v34  ;;  %v2661_v43 = vand.u32 4294901760, %v509_v35  ;;  %v625_v44 = vsub.f32 %v2620_v29, %v624_v36  ;;  %v638_v45 = vand.u32 4294901760, %v2644_v37 }
   0xa   :  { %v110_v20 = vsub.f32 %v108_v11, %v109_v15  ;;  %v150_v22 = vand.u32 4294901760, %v149_v17  ;;  %v157_v23 = vand.u32 4294901760, %v156_v18  ;;  %v2671_v46 = vsub.f32 %v510_v31, %v2646_v38  ;;  %v502_v31 = vld [vmem:[%s3445_s3 + $0x10] sm:$0xff] }
   0xb   :  { %v2673_v47 = vand.u32 4294901760, %v508_v39  ;;  %v619_v48 = vand.u32 4294901760, %v618_v40  ;;  %v632_v49 = vsub.f32 %v2631_v33, %v631_v41  ;;  %v645_v50 = vand.u32 4294901760, %v2659_v42 }
   0xc   :  { %v111_v25 = vand.u32 4294901760, %v110_v20  ;;  %2068 = vmatpush3.msra.mxu1 %v150_v22  ;;  %v2684_v51 = vsub.f32 %v509_v35, %v2661_v43  ;;  %v626_v52 = vand.u32 4294901760, %v625_v44  ;;  %v639_v53 = vsub.f32 %v2644_v37, %v638_v45  ;;  %v503_v20 = vld [vmem:[%s3445_s3 + $0x18] sm:$0xff] }
   0xd   :  { %2069 = vmatprep.subr.mxu1 %v2524_v0  ;;  %v652_v54 = vand.u32 4294901760, %v2671_v46  ;;  %v2696_v55 = vsub.f32 %v508_v39, %v2673_v47  ;;  %v633_v56 = vand.u32 4294901760, %v632_v49  ;;  %v646_v57 = vsub.f32 %v2659_v42, %v645_v50  ;;  %v501_v49 = vld [vmem:[%s3445_s3 + $0x8] sm:$0xff] }
   0xe   :  { %2065 = vmatmul.mubr.f32.vlgmr.msra.gmra.mxu0 %v111_v25  ;;  %2070 = vmatpush3.msra.mxu1 %v157_v23  ;;  %v659_v58 = vand.u32 4294901760, %v2684_v51  ;;  %v640_v59 = vand.u32 4294901760, %v639_v53  ;;  %v2779_v19 = vand.u32 4294901760, %v504_v14  ;;  %v2794_v28 = vand.u32 4294901760, %v503_v20 }
   0xf   :  { %2075 = vmatpush3.msra.mxu0 %v147_v8  ;;  %2072 = vmatmul.mubr.f32.vlgmr.msra.gmra.mxu1 %v2585_v7  ;;  %v653_v60 = vsub.f32 %v2671_v46, %v652_v54  ;;  %v666_v61 = vand.u32 4294901760, %v2696_v55  ;;  %v647_v62 = vand.u32 4294901760, %v646_v57  ;;  %v2804_v44 = vand.u32 4294901760, %v502_v31 }
  0x10   :  { %2076 = vmatprep.subr.mxu0 %v2524_v0  ;;  %2081 = vmatprep.subr.mxu1 %v2524_v0  ;;  %v660_v63 = vsub.f32 %v2684_v51, %v659_v58  ;;  %v2791_v25 = vsub.f32 %v504_v14, %v2779_v19  ;;  %v2820_v57 = vand.u32 4294901760, %v501_v49 }
  0x11   :  { %2077 = vmatpush3.msra.mxu0 %v154_v9  ;;  %2078 = vmatprep.mubr.msk.f32.mxu0 %vm2525_vm1, %v2524_v0  ;;  %v654_v1 = vand.u32 4294901760, %v653_v60  ;;  %v667_v2 = vsub.f32 %v2696_v55, %v666_v61  ;;  %v500_v60 = vld [vmem:[%s3445_s3] sm:$0xff] }
  0x12   :  { %2082 = vmatpush3.msra.mxu1 %v2577_v4  ;;  %2079 = vmatmul.mubr.f32.vlgmr.msra.gmra.mxu0 %v108_v11  ;;  %v661_v3 = vand.u32 4294901760, %v660_v63  ;;  %v3455_v40 = vand.u32 4294901760, %v2791_v25 }
  0x13   :  { %2083 = vmatprep.subr.mxu1 %v2524_v0  ;;  %2088 = vmatprep.subr.mxu0 %v2524_v0 }
  0x14   :  { %2084 = vmatpush3.msra.mxu1 %v2579_v5  ;;  %2085 = vmatprep.mubr.msk.f32.mxu1 %vm2525_vm1, %v2524_v0  ;;  %v695_v53 = vsub.f32 %v2791_v25, %v3455_v40 }
  0x15   :  { %2089 = vmatpush3.msra.mxu0 %v148_v12  ;;  %2086 = vmatmul.mubr.f32.vlgmr.msra.gmra.mxu1 %v109_v15 }
  0x16   :  { %2090 = vmatprep.subr.mxu0 %v2524_v0  ;;  %2095 = vmatprep.subr.mxu1 %v2524_v0 }
  0x17   :  { %2091 = vmatpush3.msra.mxu0 %v155_v13  ;;  %2092 = vmatprep.mubr.msk.f32.mxu0 %vm2525_vm1, %v2524_v0  ;;  %v2765_v13 = vand.u32 4294901760, %v505_v10 }
  0x18   :  { %2096 = vmatpush3.msra.mxu1 %v2577_v4  ;;  %2093 = vmatmul.mubr.f32.vlgmr.msra.gmra.mxu0 %v2585_v7  ;;  %v668_v4 = vand.u32 4294901760, %v667_v2  ;;  %v2833_v2 = vand.u32 4294901760, %v500_v60 }
  0x19   :  { %2097 = vmatprep.subr.mxu1 %v2524_v0  ;;  %2099 = vmatprep.mubr.msk.f32.mxu1 %vm2525_vm1, %v2524_v0  ;;  %v2777_v18 = vsub.f32 %v505_v10, %v2765_v13 }
  0x1a   :  { %2098 = vmatpush3.msra.mxu1 %v2579_v5  ;;  %2102 = vmatprep.subr.mxu0 %v2524_v0  ;;  %v507_v5 = vld [vmem:[%s3445_s3 + $0x38] sm:$0xff] }
  0x1b   :  { %2100 = vmatmul.mubr.f32.vlgmr.msra.gmra.mxu1 %v2585_v7  ;;  %2137 = vmatprep.subr.mxu1 %v2524_v0  ;;  %v2746_v6 = vand.u32 4294901760, %v507_v5  ;;  %v506_v7 = vld [vmem:[%s3445_s3 + $0x30] sm:$0xff]  ;;  %v3456_v24 = vand.u32 4294901760, %v2777_v18 }
  0x1c   :  { %2138 = vmatpush3.msra.mxu1 %v619_v48  ;;  %2103 = vmatpush3.msra.mxu0 %v2600_v16  ;;  %v2754_v9 = vand.u32 4294901760, %v506_v7  ;;  %v2808_v48 = vsub.f32 %v503_v20, %v2794_v28 }
  0x1d   :  { %2139 = vmatprep.subr.mxu1 %v2524_v0  ;;  %2104 = vmatprep.subr.mxu0 %v2524_v0  ;;  %v2752_v8 = vsub.f32 %v507_v5, %v2746_v6  ;;  %v688_v39 = vsub.f32 %v2777_v18, %v3456_v24 }
  0x1e   :  { %2140 = vmatpush3.msra.mxu1 %v626_v52  ;;  %2105 = vmatpush3.msra.mxu0 %v2605_v21  ;;  %v2763_v12 = vsub.f32 %v506_v7, %v2754_v9  ;;  %v2846_v7 = vsub.f32 %v500_v60, %v2833_v2 }
  0x1f   :  { %2141 = vmatprep.subr.mxu1 %v2524_v0  ;;  %2106 = vmatprep.subr.mxu0 %v2524_v0  ;;  %v673_v11 = vand.u32 4294901760, %v2752_v8  ;;  %v689_v52 = vand.u32 4294901760, %v688_v39 }
  0x20   :  { %2142 = vmatpush3.msra.mxu1 %v633_v56  ;;  %2107 = vmatpush3.msra.mxu0 %v2613_v27  ;;  %v680_v17 = vand.u32 4294901760, %v2763_v12  ;;  %v2818_v56 = vsub.f32 %v502_v31, %v2804_v44  ;;  %v3451_v20 = vand.u32 4294901760, %v2846_v7 }
  0x21   :  { %2143 = vmatprep.subr.mxu1 %v2524_v0  ;;  %2108 = vmatprep.subr.mxu0 %v2524_v0  ;;  %v674_v15 = vsub.f32 %v2752_v8, %v673_v11 }
  0x22   :  { %2144 = vmatpush3.msra.mxu1 %v640_v59  ;;  %2109 = vmatpush3.msra.mxu0 %v2622_v30  ;;  %v681_v23 = vsub.f32 %v2763_v12, %v680_v17  ;;  %v3454_v59 = vand.u32 4294901760, %v2808_v48  ;;  %v3453_v63 = vand.u32 4294901760, %v2818_v56 }
  0x23   :  { %2145 = vmatprep.subr.mxu1 %v2524_v0  ;;  %2110 = vmatprep.subr.mxu0 %v2524_v0  ;;  %v675_v22 = vand.u32 4294901760, %v674_v15 }
  0x24   :  { %2146 = vmatpush3.msra.mxu1 %v647_v62  ;;  %2111 = vmatpush3.msra.mxu0 %v2633_v34  ;;  %v682_v35 = vand.u32 4294901760, %v681_v23  ;;  %v696_v62 = vand.u32 4294901760, %v695_v53  ;;  %v723_v23 = vsub.f32 %v2846_v7, %v3451_v20 }
  0x25   :  { %2147 = vmatprep.subr.mxu1 %v2524_v0  ;;  %2112 = vmatprep.subr.mxu0 %v2524_v0 }
  0x26   :  { %2148 = vmatpush3.msra.mxu1 %v654_v1  ;;  %2113 = vmatpush3.msra.mxu0 %v2646_v38  ;;  %v2831_v1 = vsub.f32 %v501_v49, %v2820_v57  ;;  %v724_v31 = vand.u32 4294901760, %v723_v23 }
  0x27   :  { %2149 = vmatprep.subr.mxu1 %v2524_v0  ;;  %2114 = vmatprep.subr.mxu0 %v2524_v0 }
  0x28   :  { %2150 = vmatpush3.msra.mxu1 %v661_v3  ;;  %2115 = vmatpush3.msra.mxu0 %v2661_v43  ;;  %v702_v3 = vsub.f32 %v2808_v48, %v3454_v59  ;;  %v3452_v5 = vand.u32 4294901760, %v2831_v1 }
  0x29   :  { %2151 = vmatprep.subr.mxu1 %v2524_v0  ;;  %2116 = vmatprep.subr.mxu0 %v2524_v0 }
  0x2a   :  { %2152 = vmatpush3.msra.mxu1 %v668_v4  ;;  %2117 = vmatpush3.msra.mxu0 %v2673_v47  ;;  %v709_v4 = vsub.f32 %v2818_v56, %v3453_v63  ;;  %v703_v10 = vand.u32 4294901760, %v702_v3  ;;  %v716_v15 = vsub.f32 %v2831_v1, %v3452_v5 }
  0x2b   :  { %2153 = vmatprep.subr.mxu1 %v2524_v0  ;;  %2118 = vmatprep.subr.mxu0 %v2524_v0 }
  0x2c   :  { %2169 = vmatprep.mubr.msk.f32.mxu1 %vm2525_vm1, %v2524_v0  ;;  %2134 = vmatprep.mubr.msk.f32.mxu0 %vm2525_vm1, %v2524_v0  ;;  %v710_v14 = vand.u32 4294901760, %v709_v4 }
  0x2d   :  { %2119 = vmatpush3.msra.mxu0 %v2746_v6  ;;  %2154 = vmatpush3.msra.mxu1 %v675_v22  ;;  %v717_v22 = vand.u32 4294901760, %v716_v15 }
  0x2e   :  { %2120 = vmatprep.subr.mxu0 %v2524_v0  ;;  %2155 = vmatprep.subr.mxu1 %v2524_v0 }
  0x2f   :  { %2121 = vmatpush3.msra.mxu0 %v2754_v9  ;;  %2156 = vmatpush3.msra.mxu1 %v682_v35  ;;  %v1835_v35 = vld [vmem:[%s3446_s2] ss:$0 sm:$0xff] }
  0x30   :  { %2122 = vmatprep.subr.mxu0 %v2524_v0  ;;  %2157 = vmatprep.subr.mxu1 %v2524_v0 }
  0x31   :  { %2123 = vmatpush3.msra.mxu0 %v2765_v13  ;;  %2158 = vmatpush3.msra.mxu1 %v689_v52 }
  0x32   :  { %2124 = vmatprep.subr.mxu0 %v2524_v0  ;;  %2159 = vmatprep.subr.mxu1 %v2524_v0 }
  0x33   :  { %2125 = vmatpush3.msra.mxu0 %v2779_v19  ;;  %2160 = vmatpush3.msra.mxu1 %v696_v62 }
  0x34   :  { %2126 = vmatprep.subr.mxu0 %v2524_v0  ;;  %2161 = vmatprep.subr.mxu1 %v2524_v0 }
  0x35   :  { %2127 = vmatpush3.msra.mxu0 %v2794_v28  ;;  %2162 = vmatpush3.msra.mxu1 %v703_v10 }
  0x36   :  { %2128 = vmatprep.subr.mxu0 %v2524_v0  ;;  %2163 = vmatprep.subr.mxu1 %v2524_v0 }
  0x37   :  { %2129 = vmatpush3.msra.mxu0 %v2804_v44  ;;  %2164 = vmatpush3.msra.mxu1 %v710_v14 }
  0x38   :  { %2130 = vmatprep.subr.mxu0 %v2524_v0  ;;  %2165 = vmatprep.subr.mxu1 %v2524_v0 }
  0x39   :  { %2131 = vmatpush3.msra.mxu0 %v2820_v57  ;;  %2166 = vmatpush3.msra.mxu1 %v717_v22 }
  0x3a   :  { %2132 = vmatprep.subr.mxu0 %v2524_v0  ;;  %2167 = vmatprep.subr.mxu1 %v2524_v0 }
  0x3b   :  { %2133 = vmatpush3.msra.mxu0 %v2833_v2  ;;  %2168 = vmatpush3.msra.mxu1 %v724_v31 }
  0x3c   :  { %2172 = vmatprep.subr.mxu0 %v2524_v0  ;;  %2207 = vmatprep.subr.mxu1 %v2524_v0 }
  0xce   :  { %v113_v39 = vpop.f32.mrf.mxu0 }
  0xcf   :  { %v114_v49 = vadd.f32 %v1835_v35, %v113_v39  ;;  %v194_v53 = vpop.f32.mrf.mxu1 }
  0xd0   :  { %v2066_v52 = vpop.f32.mrf.mxu0 }
  0xd1   :  { %v195_v60 = vadd.f32 %v194_v53, %v114_v49  ;;  %v2073_v62 = vpop.f32.mrf.mxu1 }
  0xd2   :  { %v270_v3 = vpop.f32.mrf.mxu0  ;;  %v1172_v62 = vld [vmem:[%s3447_s5 + $0x38] sm:$0xff] }
  0xd3   :  { %v271_v4 = vadd.f32 %v270_v3, %v195_v60 }
  0xd4   :  { %v2080_v10 = vpop.f32.mrf.mxu0 }
  0xd5   :  { %v345_v14 = vpop.f32.mrf.mxu1  ;;  %v3149_v10 = vand.u32 4294901760, %v1172_v62 }
  0xd6   :  { %v346_v15 = vadd.f32 %v345_v14, %v271_v4  ;;  %v1171_v14 = vld [vmem:[%s3447_s5 + $0x30] sm:$0xff] }
  0xd7   :  { %v2087_v22 = vpop.f32.mrf.mxu1 }
  0xd8   :  { %v422_v23 = vpop.f32.mrf.mxu0  ;;  %v3158_v22 = vsub.f32 %v1172_v62, %v3149_v10 }
  0xd9   :  { %v423_v31 = vadd.f32 %v422_v23, %v346_v15  ;;  %v3160_v23 = vand.u32 4294901760, %v1171_v14 }
  0xda   :  { %v2094_v20 = vpop.f32.mrf.mxu0 }
  0xdb   :  { %v495_v5 = vpop.f32.mrf.mxu1 }
  0xdc   :  { %v496_v63 = vadd.f32 %v495_v5, %v423_v31  ;;  %v1170_v31 = vld [vmem:[%s3447_s5 + $0x28] sm:$0xff] }
  0xdd   :  { %v2101_v59 = vpop.f32.mrf.mxu1 }
  0xde   :  { %v499_v40 = vmax.f32 %v496_v63, 0.0 }
  0xe0   :  { %v2866_v24 = vand.u32 4294901760, %v499_v40 }
  0xe2   :  { %v2869_v35 = vsub.f32 %v499_v40, %v2866_v24  ;;  %2170 = vmatmul.mubr.f32.vlgmr.msra.gmra.mxu1 %v2866_v24 }
  0xe3   :  { %2208 = vmatpush3.msra.mxu1 %v2600_v16  ;;  %2239 = vmatprep.mubr.msk.f32.mxu1 %vm2525_vm1, %v2524_v0 }
  0xe4   :  { %v606_v39 = vand.u32 4294901760, %v2869_v35  ;;  %2209 = vmatprep.subr.mxu1 %v2524_v0 }
  0xe5   :  { %2210 = vmatpush3.msra.mxu1 %v2605_v21 }
  0xe6   :  { %v607_v59 = vsub.f32 %v2869_v35, %v606_v39  ;;  %2211 = vmatprep.subr.mxu1 %v2524_v0 }
  0xe7   :  { %2212 = vmatpush3.msra.mxu1 %v2613_v27 }
  0xe8   :  { %2213 = vmatprep.subr.mxu1 %v2524_v0  ;;  %v608_v40 = vand.u32 4294901760, %v607_v59  ;;  %v3170_v59 = vsub.f32 %v1171_v14, %v3160_v23 }
  0xe9   :  { %2214 = vmatpush3.msra.mxu1 %v2622_v30 }
  0xea   :  { %2215 = vmatprep.subr.mxu1 %v2524_v0  ;;  %2135 = vmatmul.mubr.f32.vlgmr.msra.gmra.mxu0 %v608_v40  ;;  %v3172_v40 = vand.u32 4294901760, %v1170_v31 }
  0xeb   :  { %2173 = vmatpush3.msra.mxu0 %v2611_v26  ;;  %2216 = vmatpush3.msra.mxu1 %v2633_v34  ;;  %v3463_v26 = vand.u32 4294901760, %v2808_v48 }
  0xec   :  { %2174 = vmatprep.subr.mxu0 %v2524_v0  ;;  %2217 = vmatprep.subr.mxu1 %v2524_v0 }
  0xed   :  { %2175 = vmatpush3.msra.mxu0 %v2620_v29  ;;  %2218 = vmatpush3.msra.mxu1 %v2646_v38  ;;  %v3465_v29 = vand.u32 4294901760, %v2831_v1 }
  0xee   :  { %2176 = vmatprep.subr.mxu0 %v2524_v0  ;;  %2219 = vmatprep.subr.mxu1 %v2524_v0 }
  0xef   :  { %2177 = vmatpush3.msra.mxu0 %v2631_v33  ;;  %2220 = vmatpush3.msra.mxu1 %v2661_v43 }
  0xf0   :  { %2178 = vmatprep.subr.mxu0 %v2524_v0  ;;  %2221 = vmatprep.subr.mxu1 %v2524_v0 }
  0xf1   :  { %2179 = vmatpush3.msra.mxu0 %v2644_v37  ;;  %2222 = vmatpush3.msra.mxu1 %v2673_v47 }
  0xf2   :  { %2180 = vmatprep.subr.mxu0 %v2524_v0  ;;  %2223 = vmatprep.subr.mxu1 %v2524_v0 }
  0xf3   :  { %2181 = vmatpush3.msra.mxu0 %v2659_v42  ;;  %2224 = vmatpush3.msra.mxu1 %v2746_v6  ;;  %v1176_v42 = vld [vmem:[%s3447_s5 + $0x58] sm:$0xff] }
  0xf4   :  { %2182 = vmatprep.subr.mxu0 %v2524_v0  ;;  %2225 = vmatprep.subr.mxu1 %v2524_v0 }
  0xf5   :  { %2183 = vmatpush3.msra.mxu0 %v2671_v46  ;;  %2226 = vmatpush3.msra.mxu1 %v2754_v9  ;;  %v3060_v46 = vand.u32 4294901760, %v1176_v42 }
  0xf6   :  { %2184 = vmatprep.subr.mxu0 %v2524_v0  ;;  %2227 = vmatprep.subr.mxu1 %v2524_v0 }
  0xf7   :  { %2185 = vmatpush3.msra.mxu0 %v2684_v51  ;;  %2228 = vmatpush3.msra.mxu1 %v2765_v13  ;;  %v1173_v51 = vld [vmem:[%s3447_s5 + $0x40] sm:$0xff] }
  0xf8   :  { %2186 = vmatprep.subr.mxu0 %v2524_v0  ;;  %2229 = vmatprep.subr.mxu1 %v2524_v0 }
  0xf9   :  { %2187 = vmatpush3.msra.mxu0 %v2696_v55  ;;  %2230 = vmatpush3.msra.mxu1 %v2779_v19 }
  0xfa   :  { %2188 = vmatprep.subr.mxu0 %v2524_v0  ;;  %2231 = vmatprep.subr.mxu1 %v2524_v0 }
  0xfb   :  { %2189 = vmatpush3.msra.mxu0 %v2752_v8  ;;  %2232 = vmatpush3.msra.mxu1 %v2794_v28 }
  0xfc   :  { %2190 = vmatprep.subr.mxu0 %v2524_v0  ;;  %2233 = vmatprep.subr.mxu1 %v2524_v0 }
  0xfd   :  { %2191 = vmatpush3.msra.mxu0 %v2763_v12  ;;  %2234 = vmatpush3.msra.mxu1 %v2804_v44 }
  0xfe   :  { %2192 = vmatprep.subr.mxu0 %v2524_v0  ;;  %2235 = vmatprep.subr.mxu1 %v2524_v0 }
  0xff   :  { %2193 = vmatpush3.msra.mxu0 %v2777_v18  ;;  %2236 = vmatpush3.msra.mxu1 %v2820_v57 }
 0x100   :  { %2194 = vmatprep.subr.mxu0 %v2524_v0  ;;  %2237 = vmatprep.subr.mxu1 %v2524_v0 }
 0x101   :  { %2195 = vmatpush3.msra.mxu0 %v2791_v25  ;;  %2238 = vmatpush3.msra.mxu1 %v2833_v2 }
 0x102   :  { %2196 = vmatprep.subr.mxu0 %v2524_v0  ;;  %2240 = vmatmul.mubr.f32.vlgmr.msra.gmra.mxu1 %v606_v39  ;;  %v1338_v39 = vand.u32 4294901760, %v3158_v22 }
 0x103   :  { %2277 = vmatprep.subr.mxu1 %v2524_v0  ;;  %2197 = vmatpush3.msra.mxu0 %v2808_v48 }
 0x104   :  { %2278 = vmatpush3.msra.mxu1 %v2600_v16  ;;  %2198 = vmatprep.subr.mxu0 %v2524_v0  ;;  %v3461_v16 = vand.u32 4294901760, %v2777_v18 }
 0x105   :  { %2279 = vmatprep.subr.mxu1 %v2524_v0  ;;  %2199 = vmatpush3.msra.mxu0 %v2818_v56 }
 0x106   :  { %2280 = vmatpush3.msra.mxu1 %v2605_v21  ;;  %2200 = vmatprep.subr.mxu0 %v2524_v0  ;;  %v3462_v21 = vand.u32 4294901760, %v2791_v25 }
 0x107   :  { %2281 = vmatprep.subr.mxu1 %v2524_v0  ;;  %2201 = vmatpush3.msra.mxu0 %v2831_v1 }
 0x108   :  { %2282 = vmatpush3.msra.mxu1 %v2613_v27  ;;  %2202 = vmatprep.subr.mxu0 %v2524_v0  ;;  %v3464_v27 = vand.u32 4294901760, %v2818_v56 }
 0x109   :  { %2283 = vmatprep.subr.mxu1 %v2524_v0  ;;  %2203 = vmatpush3.msra.mxu0 %v2846_v7 }
 0x10a   :  { %2204 = vmatprep.mubr.msk.f32.mxu0 %vm2525_vm1, %v2524_v0  ;;  %2284 = vmatpush3.msra.mxu1 %v2622_v30  ;;  %v3466_v30 = vand.u32 4294901760, %v2846_v7 }
 0x10b   :  { %2205 = vmatmul.mubr.f32.vlgmr.msra.gmra.mxu0 %v2869_v35  ;;  %2242 = vmatprep.subr.mxu0 %v2524_v0 }
 0x10c   :  { %2285 = vmatprep.subr.mxu1 %v2524_v0  ;;  %2243 = vmatpush3.msra.mxu0 %v617_v32  ;;  %v1180_v32 = vld [vmem:[%s3447_s5 + $0x78] sm:$0xff] }
 0x10d   :  { %2286 = vmatpush3.msra.mxu1 %v2633_v34  ;;  %2244 = vmatprep.subr.mxu0 %v2524_v0  ;;  %v3036_v33 = vand.u32 4294901760, %v1180_v32  ;;  %v1179_v34 = vld [vmem:[%s3447_s5 + $0x70] sm:$0xff] }
 0x10e   :  { %2287 = vmatprep.subr.mxu1 %v2524_v0  ;;  %2245 = vmatpush3.msra.mxu0 %v624_v36  ;;  %v3044_v37 = vand.u32 4294901760, %v1179_v34 }
 0x10f   :  { %2288 = vmatpush3.msra.mxu1 %v2646_v38  ;;  %2246 = vmatprep.subr.mxu0 %v2524_v0  ;;  %v3042_v36 = vsub.f32 %v1180_v32, %v3036_v33  ;;  %v1178_v38 = vld [vmem:[%s3447_s5 + $0x68] sm:$0xff] }
 0x110   :  { %2289 = vmatprep.subr.mxu1 %v2524_v0  ;;  %2247 = vmatpush3.msra.mxu0 %v631_v41  ;;  %v1177_v41 = vld [vmem:[%s3447_s5 + $0x60] sm:$0xff]  ;;  %v3074_v55 = vsub.f32 %v1179_v34, %v3044_v37 }
 0x111   :  { %2290 = vmatpush3.msra.mxu1 %v2661_v43  ;;  %2248 = vmatprep.subr.mxu0 %v2524_v0  ;;  %v3056_v43 = vand.u32 4294901760, %v1178_v38 }
 0x112   :  { %2291 = vmatprep.subr.mxu1 %v2524_v0  ;;  %2249 = vmatpush3.msra.mxu0 %v638_v45  ;;  %v3058_v45 = vand.u32 4294901760, %v1177_v41 }
 0x113   :  { %2292 = vmatpush3.msra.mxu1 %v2673_v47  ;;  %2250 = vmatprep.subr.mxu0 %v2524_v0  ;;  %v1175_v47 = vld [vmem:[%s3447_s5 + $0x50] sm:$0xff] }
 0x114   :  { %2293 = vmatprep.subr.mxu1 %v2524_v0  ;;  %2251 = vmatpush3.msra.mxu0 %v645_v50  ;;  %v1174_v50 = vld [vmem:[%s3447_s5 + $0x48] sm:$0xff]  ;;  %v3085_v8 = vsub.f32 %v1177_v41, %v3058_v45 }
 0x115   :  { %2294 = vmatpush3.msra.mxu1 %v2746_v6  ;;  %2252 = vmatprep.subr.mxu0 %v2524_v0  ;;  %v3082_v6 = vsub.f32 %v1178_v38, %v3056_v43 }
 0x116   :  { %2295 = vmatprep.subr.mxu1 %v2524_v0  ;;  %2253 = vmatpush3.msra.mxu0 %v652_v54  ;;  %v1282_v54 = vand.u32 4294901760, %v3042_v36 }
 0x117   :  { %2296 = vmatpush3.msra.mxu1 %v2754_v9  ;;  %2254 = vmatprep.subr.mxu0 %v2524_v0  ;;  %v3088_v9 = vsub.f32 %v1176_v42, %v3060_v46 }
 0x118   :  { %2297 = vmatprep.subr.mxu1 %v2524_v0  ;;  %2255 = vmatpush3.msra.mxu0 %v659_v58  ;;  %v3077_v58 = vand.u32 4294901760, %v1175_v47  ;;  %v1283_v12 = vsub.f32 %v3042_v36, %v1282_v54 }
 0x119   :  { %2298 = vmatpush3.msra.mxu1 %v2765_v13  ;;  %2256 = vmatprep.subr.mxu0 %v2524_v0  ;;  %v1289_v13 = vand.u32 4294901760, %v3074_v55  ;;  %v1310_v25 = vand.u32 4294901760, %v3088_v9 }
 0x11a   :  { %2299 = vmatprep.subr.mxu1 %v2524_v0  ;;  %2257 = vmatpush3.msra.mxu0 %v666_v61  ;;  %v3079_v61 = vand.u32 4294901760, %v1174_v50 }
 0x11b   :  { %2300 = vmatpush3.msra.mxu1 %v2779_v19  ;;  %2258 = vmatprep.subr.mxu0 %v2524_v0  ;;  %v1296_v19 = vand.u32 4294901760, %v3082_v6 }
 0x11c   :  { %2301 = vmatprep.subr.mxu1 %v2524_v0  ;;  %2259 = vmatpush3.msra.mxu0 %v673_v11  ;;  %v3091_v11 = vand.u32 4294901760, %v1173_v51  ;;  %v3102_v18 = vsub.f32 %v1174_v50, %v3079_v61 }
 0x11d   :  { %2302 = vmatpush3.msra.mxu1 %v2794_v28  ;;  %2260 = vmatprep.subr.mxu0 %v2524_v0  ;;  %v1284_v28 = vand.u32 4294901760, %v1283_v12 }
 0x11e   :  { %2303 = vmatprep.subr.mxu1 %v2524_v0  ;;  %2261 = vmatpush3.msra.mxu0 %v680_v17  ;;  %v3098_v17 = vsub.f32 %v1175_v47, %v3077_v58  ;;  %v3114_v56 = vsub.f32 %v1173_v51, %v3091_v11  ;;  %v1324_v5 = vand.u32 4294901760, %v3102_v18  ;;  %v1167_v47 = vld [vmem:[%s3447_s5 + $0x10] sm:$0xff] }
 0x11f   :  { %2304 = vmatpush3.msra.mxu1 %v2804_v44  ;;  %2262 = vmatprep.subr.mxu0 %v2524_v0  ;;  %v1290_v44 = vsub.f32 %v3074_v55, %v1289_v13 }
 0x120   :  { %2305 = vmatprep.subr.mxu1 %v2524_v0  ;;  %2263 = vmatpush3.msra.mxu0 %v3461_v16  ;;  %v1317_v48 = vand.u32 4294901760, %v3098_v17  ;;  %v1331_v52 = vand.u32 4294901760, %v3114_v56  ;;  %v1325_v60 = vsub.f32 %v3102_v18, %v1324_v5  ;;  %v1169_v16 = vld [vmem:[%s3447_s5 + $0x20] sm:$0xff] }
 0x121   :  { %2306 = vmatpush3.msra.mxu1 %v2820_v57  ;;  %2264 = vmatprep.subr.mxu0 %v2524_v0  ;;  %v1297_v57 = vsub.f32 %v3082_v6, %v1296_v19  ;;  %v1291_v1 = vand.u32 4294901760, %v1290_v44 }
 0x122   :  { %2307 = vmatprep.subr.mxu1 %v2524_v0  ;;  %2265 = vmatpush3.msra.mxu0 %v3462_v21  ;;  %v1318_v49 = vsub.f32 %v3098_v17, %v1317_v48  ;;  %v1332_v4 = vsub.f32 %v3114_v56, %v1331_v52  ;;  %v1326_v15 = vand.u32 4294901760, %v1325_v60  ;;  %v1339_v21 = vsub.f32 %v3158_v22, %v1338_v39 }
 0x123   :  { %2308 = vmatpush3.msra.mxu1 %v2833_v2  ;;  %2309 = vmatprep.mubr.msk.f32.mxu1 %vm2525_vm1, %v2524_v0  ;;  %v1311_v2 = vsub.f32 %v3088_v9, %v1310_v25  ;;  %v1298_v7 = vand.u32 4294901760, %v1297_v57  ;;  %v1166_v57 = vld [vmem:[%s3447_s5 + $0x8] sm:$0xff] }
 0x124   :  { %2266 = vmatprep.subr.mxu0 %v2524_v0  ;;  %2310 = vmatmul.mubr.f32.vlgmr.msra.gmra.mxu1 %v2866_v24  ;;  %v1319_v3 = vand.u32 4294901760, %v1318_v49  ;;  %v1333_v35 = vand.u32 4294901760, %v1332_v4  ;;  %v1340_v32 = vand.u32 4294901760, %v1339_v21  ;;  %v1165_v49 = vld [vmem:[%s3447_s5] sm:$0xff] }
 0x125   :  { %2267 = vmatpush3.msra.mxu0 %v3463_v26  ;;  %2274 = vmatprep.mubr.msk.f32.mxu0 %vm2525_vm1, %v2524_v0  ;;  %v1312_v53 = vand.u32 4294901760, %v1311_v2  ;;  %v1345_v26 = vand.u32 4294901760, %v3170_v59 }
 0x126   :  { %2268 = vmatprep.subr.mxu0 %v2524_v0  ;;  %2347 = vmatprep.subr.mxu1 %v2524_v0 }
 0x127   :  { %2269 = vmatpush3.msra.mxu0 %v3464_v27  ;;  %2379 = vmatprep.mubr.msk.f32.mxu1 %vm2525_vm1, %v2524_v0  ;;  %v3185_v27 = vsub.f32 %v1170_v31, %v3172_v40  ;;  %v1346_v34 = vsub.f32 %v3170_v59, %v1345_v26 }
 0x128   :  { %2270 = vmatprep.subr.mxu0 %v2524_v0  ;;  %2348 = vmatpush3.msra.mxu1 %v1284_v28  ;;  %v3214_v28 = vand.u32 4294901760, %v1167_v47 }
 0x129   :  { %2271 = vmatpush3.msra.mxu0 %v3465_v29  ;;  %2349 = vmatprep.subr.mxu1 %v2524_v0  ;;  %v3187_v29 = vand.u32 4294901760, %v1169_v16  ;;  %v1352_v38 = vand.u32 4294901760, %v3185_v27  ;;  %v1347_v50 = vand.u32 4294901760, %v1346_v34 }
 0x12a   :  { %2272 = vmatprep.subr.mxu0 %v2524_v0  ;;  %2350 = vmatpush3.msra.mxu1 %v1291_v1  ;;  %v3228_v2 = vsub.f32 %v1167_v47, %v3214_v28 }
 0x12b   :  { %2273 = vmatpush3.msra.mxu0 %v3466_v30  ;;  %2351 = vmatprep.subr.mxu1 %v2524_v0  ;;  %v1168_v30 = vld [vmem:[%s3447_s5 + $0x18] sm:$0xff]  ;;  %v3200_v41 = vsub.f32 %v1169_v16, %v3187_v29  ;;  %v1353_v51 = vsub.f32 %v3185_v27, %v1352_v38 }
 0x12c   :  { %2275 = vmatmul.mubr.f32.vlgmr.msra.gmra.mxu0 %v2866_v24  ;;  %2312 = vmatprep.subr.mxu0 %v2524_v0  ;;  %v1303_v24 = vand.u32 4294901760, %v3085_v8  ;;  %v3204_v42 = vand.u32 4294901760, %v1168_v30  ;;  %v3459_v60 = vand.u32 4294901760, %v3228_v2 }
 0x12d   :  { %2344 = vmatprep.mubr.msk.f32.mxu0 %vm2525_vm1, %v2524_v0  ;;  %2313 = vmatpush3.msra.mxu0 %v3036_v33  ;;  %v1359_v12 = vand.u32 4294901760, %v3200_v41 }
 0x12e   :  { %2314 = vmatprep.subr.mxu0 %v2524_v0  ;;  %v1304_v63 = vsub.f32 %v3085_v8, %v1303_v24  ;;  %2352 = vmatpush3.msra.mxu1 %v1298_v7  ;;  %v3218_v44 = vsub.f32 %v1168_v30, %v3204_v42  ;;  %v3230_v7 = vand.u32 4294901760, %v1166_v57  ;;  %v1374_v14 = vsub.f32 %v3228_v2, %v3459_v60 }
 0x12f   :  { %2315 = vmatpush3.msra.mxu0 %v3044_v37  ;;  %2353 = vmatprep.subr.mxu1 %v2524_v0  ;;  %v1360_v1 = vsub.f32 %v3200_v41, %v1359_v12 }
 0x130   :  { %2316 = vmatprep.subr.mxu0 %v2524_v0  ;;  %v1305_v20 = vand.u32 4294901760, %v1304_v63  ;;  %v1354_v63 = vand.u32 4294901760, %v1353_v51  ;;  %v3241_v62 = vsub.f32 %v1166_v57, %v3230_v7  ;;  %v1375_v16 = vand.u32 4294901760, %v1374_v14  ;;  %v1836_v14 = vld [vmem:[%s3448_s4] ss:$0 sm:$0xff] }
 0x131   :  { %2317 = vmatpush3.msra.mxu0 %v3056_v43 }
 0x132   :  { %2318 = vmatprep.subr.mxu0 %v2524_v0  ;;  %2354 = vmatpush3.msra.mxu1 %v1305_v20  ;;  %v3460_v20 = vand.u32 4294901760, %v3218_v44 }
 0x133   :  { %2319 = vmatpush3.msra.mxu0 %v3058_v45  ;;  %2355 = vmatprep.subr.mxu1 %v2524_v0 }
 0x134   :  { %2320 = vmatprep.subr.mxu0 %v2524_v0  ;;  %2356 = vmatpush3.msra.mxu1 %v1312_v53  ;;  %v1361_v53 = vand.u32 4294901760, %v1360_v1  ;;  %v1367_v4 = vsub.f32 %v3218_v44, %v3460_v20 }
 0x135   :  { %2321 = vmatpush3.msra.mxu0 %v3060_v46  ;;  %2357 = vmatprep.subr.mxu1 %v2524_v0 }
 0x136   :  { %2322 = vmatprep.subr.mxu0 %v2524_v0  ;;  %2358 = vmatpush3.msra.mxu1 %v1319_v3  ;;  %v3243_v3 = vand.u32 4294901760, %v1165_v49 }
 0x137   :  { %2323 = vmatpush3.msra.mxu0 %v3077_v58  ;;  %2359 = vmatprep.subr.mxu1 %v2524_v0 }
 0x138   :  { %2324 = vmatprep.subr.mxu0 %v2524_v0  ;;  %2360 = vmatpush3.msra.mxu1 %v1326_v15  ;;  %v3458_v15 = vand.u32 4294901760, %v3241_v62  ;;  %v3256_v31 = vsub.f32 %v1165_v49, %v3243_v3 }
 0x139   :  { %2325 = vmatpush3.msra.mxu0 %v3079_v61  ;;  %2361 = vmatprep.subr.mxu1 %v2524_v0 }
 0x13a   :  { %2326 = vmatprep.subr.mxu0 %v2524_v0  ;;  %2362 = vmatpush3.msra.mxu1 %v1333_v35  ;;  %v1368_v35 = vand.u32 4294901760, %v1367_v4  ;;  %v1381_v21 = vsub.f32 %v3241_v62, %v3458_v15  ;;  %v3457_v30 = vand.u32 4294901760, %v3256_v31 }
 0x13b   :  { %2327 = vmatpush3.msra.mxu0 %v3091_v11  ;;  %2363 = vmatprep.subr.mxu1 %v2524_v0 }
 0x13c   :  { %2328 = vmatprep.subr.mxu0 %v2524_v0  ;;  %2364 = vmatpush3.msra.mxu1 %v1340_v32  ;;  %v1382_v32 = vand.u32 4294901760, %v1381_v21  ;;  %v1388_v34 = vsub.f32 %v3256_v31, %v3457_v30 }
 0x13d   :  { %2329 = vmatpush3.msra.mxu0 %v3149_v10  ;;  %2365 = vmatprep.subr.mxu1 %v2524_v0 }
 0x13e   :  { %2330 = vmatprep.subr.mxu0 %v2524_v0  ;;  %2366 = vmatpush3.msra.mxu1 %v1347_v50  ;;  %v1389_v47 = vand.u32 4294901760, %v1388_v34 }
 0x13f   :  { %2331 = vmatpush3.msra.mxu0 %v3160_v23  ;;  %2367 = vmatprep.subr.mxu1 %v2524_v0 }
 0x140   :  { %2332 = vmatprep.subr.mxu0 %v2524_v0  ;;  %2368 = vmatpush3.msra.mxu1 %v1354_v63 }
 0x141   :  { %2333 = vmatpush3.msra.mxu0 %v3172_v40  ;;  %2369 = vmatprep.subr.mxu1 %v2524_v0 }
 0x142   :  { %2334 = vmatprep.subr.mxu0 %v2524_v0  ;;  %2370 = vmatpush3.msra.mxu1 %v1361_v53 }
 0x143   :  { %2335 = vmatpush3.msra.mxu0 %v3187_v29  ;;  %2371 = vmatprep.subr.mxu1 %v2524_v0 }
 0x144   :  { %2336 = vmatprep.subr.mxu0 %v2524_v0  ;;  %2372 = vmatpush3.msra.mxu1 %v1368_v35 }
 0x145   :  { %2337 = vmatpush3.msra.mxu0 %v3204_v42  ;;  %2373 = vmatprep.subr.mxu1 %v2524_v0 }
 0x146   :  { %2338 = vmatprep.subr.mxu0 %v2524_v0  ;;  %2374 = vmatpush3.msra.mxu1 %v1375_v16 }
 0x147   :  { %2339 = vmatpush3.msra.mxu0 %v3214_v28  ;;  %2375 = vmatprep.subr.mxu1 %v2524_v0 }
 0x148   :  { %2340 = vmatprep.subr.mxu0 %v2524_v0  ;;  %2376 = vmatpush3.msra.mxu1 %v1382_v32 }
 0x149   :  { %2341 = vmatpush3.msra.mxu0 %v3230_v7  ;;  %2377 = vmatprep.subr.mxu1 %v2524_v0 }
 0x14a   :  { %2342 = vmatprep.subr.mxu0 %v2524_v0  ;;  %2378 = vmatpush3.msra.mxu1 %v1389_v47 }
 0x14b   :  { %2343 = vmatpush3.msra.mxu0 %v3243_v3  ;;  %2417 = vmatprep.subr.mxu1 %v2524_v0 }
 0x14c   :  { %2382 = vmatprep.subr.mxu0 %v2524_v0 }
 0x1a2   :  { %v761_v50 = vpop.f32.mrf.mxu1 }
 0x1a4   :  { %v2171_v51 = vpop.f32.mrf.mxu1 }
 0x1aa   :  { %v610_v57 = vpop.f32.mrf.mxu0 }
 0x1ab   :  { %v611_v35 = vadd.f32 %v1836_v14, %v610_v57 }
 0x1ac   :  { %v2136_v63 = vpop.f32.mrf.mxu0 }
 0x1ad   :  { %v762_v21 = vadd.f32 %v761_v50, %v611_v35 }
 0x1c2   :  { %v954_v1 = vpop.f32.mrf.mxu1 }
 0x1c4   :  { %v2241_v49 = vpop.f32.mrf.mxu1 }
 0x1cb   :  { %v865_v53 = vpop.f32.mrf.mxu0 }
 0x1cc   :  { %v866_v34 = vadd.f32 %v865_v53, %v762_v21 }
 0x1cd   :  { %v2206_v4 = vpop.f32.mrf.mxu0 }
 0x1ce   :  { %v955_v47 = vadd.f32 %v954_v1, %v866_v34 }
 0x1e4   :  { %v1160_v16 = vpop.f32.mrf.mxu1 }
 0x1e6   :  { %v2311_v32 = vpop.f32.mrf.mxu1 }
 0x1ec   :  { %v1073_v30 = vpop.f32.mrf.mxu0 }
 0x1ed   :  { %v1074_v15 = vadd.f32 %v1073_v30, %v955_v47 }
 0x1ee   :  { %v2276_v60 = vpop.f32.mrf.mxu0 }
 0x1ef   :  { %v1161_v51 = vadd.f32 %v1160_v16, %v1074_v15 }
 0x1f1   :  { %v1164_v20 = vmax.f32 %v1161_v51, 0.0 }
 0x1f3   :  { %v3276_v63 = vand.u32 4294901760, %v1164_v20 }
 0x1f5   :  { %v3279_v49 = vsub.f32 %v1164_v20, %v3276_v63  ;;  %2380 = vmatmul.mubr.f32.vlgmr.msra.gmra.mxu1 %v3276_v63 }
 0x1f6   :  { %2418 = vmatpush3.msra.mxu1 %v3036_v33  ;;  %2449 = vmatprep.mubr.msk.f32.mxu1 %vm2525_vm1, %v2524_v0 }
 0x1f7   :  { %v1271_v50 = vand.u32 4294901760, %v3279_v49  ;;  %2419 = vmatprep.subr.mxu1 %v2524_v0 }
 0x1f8   :  { %2420 = vmatpush3.msra.mxu1 %v3044_v37 }
 0x1f9   :  { %2421 = vmatprep.subr.mxu1 %v2524_v0  ;;  %v1272_v60 = vsub.f32 %v3279_v49, %v1271_v50 }
 0x1fa   :  { %2422 = vmatpush3.msra.mxu1 %v3056_v43 }
 0x1fb   :  { %2423 = vmatprep.subr.mxu1 %v2524_v0  ;;  %v1273_v20 = vand.u32 4294901760, %v1272_v60 }
 0x1fc   :  { %2424 = vmatpush3.msra.mxu1 %v3058_v45 }
 0x1fd   :  { %2425 = vmatprep.subr.mxu1 %v2524_v0  ;;  %2345 = vmatmul.mubr.f32.vlgmr.msra.gmra.mxu0 %v1273_v20 }
 0x1fe   :  { %2383 = vmatpush3.msra.mxu0 %v3042_v36  ;;  %2426 = vmatpush3.msra.mxu1 %v3060_v46  ;;  %v3468_v36 = vand.u32 4294901760, %v3228_v2 }
 0x1ff   :  { %2384 = vmatprep.subr.mxu0 %v2524_v0  ;;  %2427 = vmatprep.subr.mxu1 %v2524_v0 }
 0x200   :  { %2385 = vmatpush3.msra.mxu0 %v3074_v55  ;;  %2428 = vmatpush3.msra.mxu1 %v3077_v58 }
 0x201   :  { %2386 = vmatprep.subr.mxu0 %v2524_v0  ;;  %2429 = vmatprep.subr.mxu1 %v2524_v0 }
 0x202   :  { %2387 = vmatpush3.msra.mxu0 %v3082_v6  ;;  %2430 = vmatpush3.msra.mxu1 %v3079_v61 }
 0x203   :  { %2388 = vmatprep.subr.mxu0 %v2524_v0  ;;  %2431 = vmatprep.subr.mxu1 %v2524_v0 }
 0x204   :  { %2389 = vmatpush3.msra.mxu0 %v3085_v8  ;;  %2432 = vmatpush3.msra.mxu1 %v3091_v11 }
 0x205   :  { %2390 = vmatprep.subr.mxu0 %v2524_v0  ;;  %2433 = vmatprep.subr.mxu1 %v2524_v0 }
 0x206   :  { %2391 = vmatpush3.msra.mxu0 %v3088_v9  ;;  %2434 = vmatpush3.msra.mxu1 %v3149_v10  ;;  %v1837_v9 = vld [vmem:[%s3449_s6] ss:$0 sm:$0xff] }
 0x207   :  { %2392 = vmatprep.subr.mxu0 %v2524_v0  ;;  %2435 = vmatprep.subr.mxu1 %v2524_v0 }
 0x208   :  { %2393 = vmatpush3.msra.mxu0 %v3098_v17  ;;  %2436 = vmatpush3.msra.mxu1 %v3160_v23 }
 0x209   :  { %2394 = vmatprep.subr.mxu0 %v2524_v0  ;;  %2437 = vmatprep.subr.mxu1 %v2524_v0 }
 0x20a   :  { %2395 = vmatpush3.msra.mxu0 %v3102_v18  ;;  %2438 = vmatpush3.msra.mxu1 %v3172_v40 }
 0x20b   :  { %2396 = vmatprep.subr.mxu0 %v2524_v0  ;;  %2439 = vmatprep.subr.mxu1 %v2524_v0 }
 0x20c   :  { %2397 = vmatpush3.msra.mxu0 %v3114_v56  ;;  %2440 = vmatpush3.msra.mxu1 %v3187_v29 }
 0x20d   :  { %2398 = vmatprep.subr.mxu0 %v2524_v0  ;;  %2441 = vmatprep.subr.mxu1 %v2524_v0 }
 0x20e   :  { %2399 = vmatpush3.msra.mxu0 %v3158_v22  ;;  %2442 = vmatpush3.msra.mxu1 %v3204_v42 }
 0x20f   :  { %2400 = vmatprep.subr.mxu0 %v2524_v0  ;;  %2443 = vmatprep.subr.mxu1 %v2524_v0 }
 0x210   :  { %2401 = vmatpush3.msra.mxu0 %v3170_v59  ;;  %2444 = vmatpush3.msra.mxu1 %v3214_v28 }
 0x211   :  { %2402 = vmatprep.subr.mxu0 %v2524_v0  ;;  %2445 = vmatprep.subr.mxu1 %v2524_v0 }
 0x212   :  { %2403 = vmatpush3.msra.mxu0 %v3185_v27  ;;  %2446 = vmatpush3.msra.mxu1 %v3230_v7 }
 0x213   :  { %2404 = vmatprep.subr.mxu0 %v2524_v0  ;;  %2447 = vmatprep.subr.mxu1 %v2524_v0 }
 0x214   :  { %2405 = vmatpush3.msra.mxu0 %v3200_v41  ;;  %2448 = vmatpush3.msra.mxu1 %v3243_v3 }
 0x215   :  { %2406 = vmatprep.subr.mxu0 %v2524_v0  ;;  %2450 = vmatmul.mubr.f32.vlgmr.msra.gmra.mxu1 %v1271_v50 }
 0x216   :  { %2487 = vmatprep.subr.mxu1 %v2524_v0  ;;  %2407 = vmatpush3.msra.mxu0 %v3218_v44 }
 0x217   :  { %2488 = vmatpush3.msra.mxu1 %v3036_v33  ;;  %2408 = vmatprep.subr.mxu0 %v2524_v0  ;;  %v3467_v33 = vand.u32 4294901760, %v3218_v44 }
 0x218   :  { %2489 = vmatprep.subr.mxu1 %v2524_v0  ;;  %2409 = vmatpush3.msra.mxu0 %v3228_v2 }
 0x219   :  { %2490 = vmatpush3.msra.mxu1 %v3044_v37  ;;  %2410 = vmatprep.subr.mxu0 %v2524_v0  ;;  %v3469_v37 = vand.u32 4294901760, %v3241_v62 }
 0x21a   :  { %2491 = vmatprep.subr.mxu1 %v2524_v0  ;;  %2411 = vmatpush3.msra.mxu0 %v3241_v62 }
 0x21b   :  { %2492 = vmatpush3.msra.mxu1 %v3056_v43  ;;  %2412 = vmatprep.subr.mxu0 %v2524_v0  ;;  %v3470_v43 = vand.u32 4294901760, %v3256_v31 }
 0x21c   :  { %2493 = vmatprep.subr.mxu1 %v2524_v0  ;;  %2413 = vmatpush3.msra.mxu0 %v3256_v31 }
 0x21d   :  { %2414 = vmatprep.mubr.msk.f32.mxu0 %vm2525_vm1, %v2524_v0  ;;  %2494 = vmatpush3.msra.mxu1 %v3058_v45 }
 0x21e   :  { %2415 = vmatmul.mubr.f32.vlgmr.msra.gmra.mxu0 %v3279_v49  ;;  %2452 = vmatprep.subr.mxu0 %v2524_v0 }
 0x21f   :  { %2495 = vmatprep.subr.mxu1 %v2524_v0  ;;  %2453 = vmatpush3.msra.mxu0 %v1282_v54 }
 0x220   :  { %2496 = vmatpush3.msra.mxu1 %v3060_v46  ;;  %2454 = vmatprep.subr.mxu0 %v2524_v0 }
 0x221   :  { %2497 = vmatprep.subr.mxu1 %v2524_v0  ;;  %2455 = vmatpush3.msra.mxu0 %v1289_v13 }
 0x222   :  { %2498 = vmatpush3.msra.mxu1 %v3077_v58  ;;  %2456 = vmatprep.subr.mxu0 %v2524_v0 }
 0x223   :  { %2499 = vmatprep.subr.mxu1 %v2524_v0  ;;  %2457 = vmatpush3.msra.mxu0 %v1296_v19 }
 0x224   :  { %2500 = vmatpush3.msra.mxu1 %v3079_v61  ;;  %2458 = vmatprep.subr.mxu0 %v2524_v0 }
 0x225   :  { %2501 = vmatprep.subr.mxu1 %v2524_v0  ;;  %2459 = vmatpush3.msra.mxu0 %v1303_v24 }
 0x226   :  { %2502 = vmatpush3.msra.mxu1 %v3091_v11  ;;  %2460 = vmatprep.subr.mxu0 %v2524_v0 }
 0x227   :  { %2503 = vmatprep.subr.mxu1 %v2524_v0  ;;  %2461 = vmatpush3.msra.mxu0 %v1310_v25 }
 0x228   :  { %2504 = vmatpush3.msra.mxu1 %v3149_v10  ;;  %2462 = vmatprep.subr.mxu0 %v2524_v0 }
 0x229   :  { %2505 = vmatprep.subr.mxu1 %v2524_v0  ;;  %2463 = vmatpush3.msra.mxu0 %v1317_v48 }
 0x22a   :  { %2506 = vmatpush3.msra.mxu1 %v3160_v23  ;;  %2464 = vmatprep.subr.mxu0 %v2524_v0 }
 0x22b   :  { %2507 = vmatprep.subr.mxu1 %v2524_v0  ;;  %2465 = vmatpush3.msra.mxu0 %v1324_v5 }
 0x22c   :  { %2508 = vmatpush3.msra.mxu1 %v3172_v40  ;;  %2466 = vmatprep.subr.mxu0 %v2524_v0 }
 0x22d   :  { %2509 = vmatprep.subr.mxu1 %v2524_v0  ;;  %2467 = vmatpush3.msra.mxu0 %v1331_v52 }
 0x22e   :  { %2510 = vmatpush3.msra.mxu1 %v3187_v29  ;;  %2468 = vmatprep.subr.mxu0 %v2524_v0 }
 0x22f   :  { %2511 = vmatprep.subr.mxu1 %v2524_v0  ;;  %2469 = vmatpush3.msra.mxu0 %v1338_v39 }
 0x230   :  { %2512 = vmatpush3.msra.mxu1 %v3204_v42  ;;  %2470 = vmatprep.subr.mxu0 %v2524_v0 }
 0x231   :  { %2513 = vmatprep.subr.mxu1 %v2524_v0  ;;  %2471 = vmatpush3.msra.mxu0 %v1345_v26 }
 0x232   :  { %2514 = vmatpush3.msra.mxu1 %v3214_v28  ;;  %2472 = vmatprep.subr.mxu0 %v2524_v0 }
 0x233   :  { %2515 = vmatprep.subr.mxu1 %v2524_v0  ;;  %2473 = vmatpush3.msra.mxu0 %v1352_v38 }
 0x234   :  { %2516 = vmatpush3.msra.mxu1 %v3230_v7  ;;  %2474 = vmatprep.subr.mxu0 %v2524_v0 }
 0x235   :  { %2517 = vmatprep.subr.mxu1 %v2524_v0  ;;  %2475 = vmatpush3.msra.mxu0 %v1359_v12 }
 0x236   :  { %2518 = vmatpush3.msra.mxu1 %v3243_v3  ;;  %2519 = vmatprep.mubr.msk.f32.mxu1 %vm2525_vm1, %v2524_v0 }
 0x237   :  { %2476 = vmatprep.subr.mxu0 %v2524_v0  ;;  %2520 = vmatmul.mubr.f32.vlgmr.msra.gmra.mxu1 %v3276_v63 }
 0x238   :  { %2477 = vmatpush3.msra.mxu0 %v3467_v33  ;;  %2484 = vmatprep.mubr.msk.f32.mxu0 %vm2525_vm1, %v2524_v0 }
 0x239   :  { %2478 = vmatprep.subr.mxu0 %v2524_v0 }
 0x23a   :  { %2479 = vmatpush3.msra.mxu0 %v3468_v36 }
 0x23b   :  { %2480 = vmatprep.subr.mxu0 %v2524_v0 }
 0x23c   :  { %2481 = vmatpush3.msra.mxu0 %v3469_v37 }
 0x23d   :  { %2482 = vmatprep.subr.mxu0 %v2524_v0 }
 0x23e   :  { %2483 = vmatpush3.msra.mxu0 %v3470_v43 }
 0x23f   :  { %2485 = vmatmul.mubr.f32.vlgmr.msra.gmra.mxu0 %v3276_v63 }
 0x2b5   :  { %v1426_v45 = vpop.f32.mrf.mxu1 }
 0x2b7   :  { %v2381_v46 = vpop.f32.mrf.mxu1 }
 0x2bd   :  { %v1275_v54 = vpop.f32.mrf.mxu0 }
 0x2be   :  { %v1276_v11 = vadd.f32 %v1837_v9, %v1275_v54 }
 0x2bf   :  { %v2346_v55 = vpop.f32.mrf.mxu0 }
 0x2c0   :  { %v1427_v0 = vadd.f32 %v1426_v45, %v1276_v11 }
 0x2d5   :  { %v1619_v58 = vpop.f32.mrf.mxu1 }
 0x2d7   :  { %v2451_v61 = vpop.f32.mrf.mxu1 }
 0x2de   :  { %v1530_v6 = vpop.f32.mrf.mxu0 }
 0x2df   :  { %v1531_v18 = vadd.f32 %v1530_v6, %v1427_v0 }
 0x2e0   :  { %v2416_v8 = vpop.f32.mrf.mxu0 }
 0x2e1   :  { %v1620_v19 = vadd.f32 %v1619_v58, %v1531_v18 }
 0x2f7   :  { %v1825_v13 = vpop.f32.mrf.mxu1 }
 0x2f9   :  { %v2521_v17 = vpop.f32.mrf.mxu1 }
 0x2ff   :  { %v1738_v24 = vpop.f32.mrf.mxu0 }
 0x300   :  { %v1739_v25 = vadd.f32 %v1738_v24, %v1620_v19 }
 0x301   :  { %v2486_v48 = vpop.f32.mrf.mxu0 }
 0x302   :  { %v1826_v56 = vadd.f32 %v1825_v13, %v1739_v25 }
 0x304   :  { %1830 = vst.msk [vmem:[%s3450_s7] sm:$0xff] %vm1829_vm2, %v1826_v56 }

</bundles_post_ra>
